<compile_context>
chip_gen: v7x
topology: tpu7x:2x2x1
jax: 0.10.0
libtpu: 0.0.40
codegen_flags: <defaults>
</compile_context>

<pallas_src>
import jax
import jax.numpy as jnp
from jax import lax
from jax.experimental import pallas as pl
from jax.experimental.pallas import tpu as pltpu


# ------------------------------ helpers ------------------------------------ #

def _triple(v):
    if isinstance(v, (tuple, list)):
        assert len(v) == 3
        return tuple(int(i) for i in v)
    return (int(v),) * 3


def _round_up(v, m):
    return ((v + m - 1) // m) * m


# ------------------------------ Pallas kernel ------------------------------ #

def _make_kernel(*, kD, kH, kW, Wp, Lo_p, res_tap, res_start, residual):
    """One grid step = one (sample, output-depth-plane).

    refs (in order):
      x_refs[kd]: (1, 1, Cin_p, Lpad)   bf16, depth plane (d + kd) of the padded volume
      w_ref:      (Cout_p, kD*kH*kW*Cin_p)  bf16, BN scale folded in
      shift_ref:  (Cout_p, 1)           f32, folded conv-bias + BN shift
      o_ref:      (1, 1, Cout_p, Lo_p)  f32 output plane (pad cols trimmed in wrapper)
    """

    def kernel(*refs):
        x_refs = refs[:kD]
        w_ref, shift_ref, o_ref = refs[kD], refs[kD + 1], refs[kD + 2]

        # Build the fat matmul RHS: 27 static lane slices stacked along the
        # contraction axis -> (kD*kH*kW*Cin_p, Lo_p).
        taps = []
        for kd in range(kD):
            plane = x_refs[kd][0, 0, :, :]          # (Cin_p, Lpad) contiguous slab
            for kh in range(kH):
                for kw in range(kW):
                    start = kh * Wp + kw            # static lane offset
                    taps.append(plane[:, start:start + Lo_p])
        rhs = jnp.concatenate(taps, axis=0)

        # Single wide MXU matmul per output-depth plane, f32 accumulate.
        acc = jnp.dot(w_ref[...], rhs, preferred_element_type=jnp.float32)

        out = acc + shift_ref[...]                  # folded conv-bias + BN (eval)
        if residual:
            res = x_refs[res_tap][0, 0, :, res_start:res_start + Lo_p]
            out = out + res.astype(jnp.float32)
        o_ref[0, 0, :, :] = jnp.maximum(out, 0.0).astype(o_ref.dtype)   # ReLU

    return kernel


# ------------------------------ wrapper ------------------------------------ #

def conv3d_bn_relu(x, params, *, stride=1, padding=0, residual=False, eps=1e-5,
                   compute_dtype=jnp.bfloat16):
    """Forward of the PyTorch block: Conv3d -> BatchNorm3d(eval) -> (+x) -> ReLU."""
    N, Cin, D, H, W = x.shape
    w = params["conv_w"]                       # (Cout, Cin, kD, kH, kW)
    Cout, Cin_w, kD, kH, kW = w.shape
    assert Cin_w == Cin
    sd, sh, sw = _triple(stride)
    pd, ph, pw = _triple(padding)
    # TODO(synk): only stride=1 is implemented; strided conv needs a different
    # output-lane mapping (output grid != input grid).
    assert (sd, sh, sw) == (1, 1, 1), "only stride=1 supported"

    Dp, Hp, Wp = D + 2 * pd, H + 2 * ph, W + 2 * pw
    Do, Ho, Wo = Dp - kD + 1, Hp - kH + 1, Wp - kW + 1
    if residual:
        assert Cout == Cin and (Do, Ho, Wo) == (D, H, W), \
            "residual requires identical input/output shapes"

    Cin_p = _round_up(Cin, 8)                  # sublane-friendly channel padding
    Cout_p = _round_up(Cout, 8)
    Lo = Ho * Wp                               # flattened (h, w) output, row-major
    Lo_p = _round_up(Lo, 128)                  # lane-dense output (unmasked vst)
    res_start = ph * Wp + pw
    max_tap = (kH - 1) * Wp + (kW - 1)
    Lpad = _round_up(max(Hp * Wp, max_tap + Lo_p, res_start + Lo_p), 128)
    K = kD * kH * kW * Cin_p

    # ---- operand prep (cheap one-time XLA glue, hoisted out of the grid) ---
    # Depth outside the minor dims: (N, Dp, Cin_p, Lpad); each depth slab is a
    # contiguous stack of full (8,128) tiles.
    xp = jnp.pad(x, ((0, 0), (0, Cin_p - Cin), (pd, pd), (ph, ph), (pw, pw)))
    xp = jnp.transpose(xp, (0, 2, 1, 3, 4)).reshape(N, Dp, Cin_p, Hp * Wp)
    xp = jnp.pad(xp, ((0, 0), (0, 0), (0, 0), (0, Lpad - Hp * Wp)))
    xp = xp.astype(compute_dtype)

    # Fold eval-mode BatchNorm scale into the conv weights, and conv bias +
    # BN mean/beta into a single per-channel shift.
    # TODO(synk): training-mode BN (batch statistics) is not implemented.
    scale = params["bn_gamma"] / jnp.sqrt(params["bn_var"] + eps)          # (Cout,)
    shift = (params["conv_b"] - params["bn_mean"]) * scale + params["bn_beta"]
    w_s = w * scale[:, None, None, None, None]
    wt = jnp.transpose(w_s, (0, 2, 3, 4, 1))   # (Cout, kD, kH, kW, Cin) matches RHS order
    wt = jnp.pad(wt, ((0, Cout_p - Cout), (0, 0), (0, 0), (0, 0), (0, Cin_p - Cin)))
    wt = wt.reshape(Cout_p, K).astype(compute_dtype)
    shift_p = jnp.pad(shift, (0, Cout_p - Cout)).astype(jnp.float32)[:, None]

    kernel = _make_kernel(kD=kD, kH=kH, kW=kW, Wp=Wp, Lo_p=Lo_p,
                          res_tap=pd, res_start=res_start, residual=residual)

    # Depth-halo via kD aliased input operands: operand kd's index_map picks
    # depth plane (d + kd), so each step DMAs exactly its kD-plane halo with
    # fully static in-kernel indexing.
    x_specs = [
        pl.BlockSpec((1, 1, Cin_p, Lpad), lambda n, d, kd=kd: (n, d + kd, 0, 0))
        for kd in range(kD)
    ]

    out_flat = pl.pallas_call(
        kernel,
        out_shape=jax.ShapeDtypeStruct((N, Do, Cout_p, Lo_p), x.dtype),
        grid=(N, Do),
        in_specs=x_specs + [
            pl.BlockSpec((Cout_p, K), lambda n, d: (0, 0)),
            pl.BlockSpec((Cout_p, 1), lambda n, d: (0, 0)),
        ],
        out_specs=pl.BlockSpec((1, 1, Cout_p, Lo_p), lambda n, d: (n, d, 0, 0)),
        compiler_params=pltpu.CompilerParams(
            # Both axes independent (disjoint output blocks): lets the megacore
            # split happen on N and/or Do (v7x has 2 TCs even when N == 1).
            dimension_semantics=("parallel", "parallel")),
    )(*([xp] * kD), wt, shift_p)

    out = out_flat[:, :, :Cout, :Lo].reshape(N, Do, Cout, Ho, Wp)[..., :Wo]
    return jnp.transpose(out, (0, 2, 1, 3, 4))          # (N, Cout, Do, Ho, Wo)


# --------------------------- pure-JAX reference ----------------------------- #

def conv3d_bn_relu_ref(x, params, *, stride=1, padding=0, residual=False, eps=1e-5):
    sd, sh, sw = _triple(stride)
    pd, ph, pw = _triple(padding)
    y = lax.conv_general_dilated(
        x, params["conv_w"], window_strides=(sd, sh, sw),
        padding=[(pd, pd), (ph, ph), (pw, pw)],
        dimension_numbers=("NCDHW", "OIDHW", "NCDHW"))
    y = y + params["conv_b"][None, :, None, None, None]
    g = params["bn_gamma"][None, :, None, None, None]
    be = params["bn_beta"][None, :, None, None, None]
    m = params["bn_mean"][None, :, None, None, None]
    v = params["bn_var"][None, :, None, None, None]
    y = (y - m) / jnp.sqrt(v + eps) * g + be
    if residual:
        y = y + x
    return jnp.maximum(y, 0.0)


# --------------------------------- main ------------------------------------- #

def init_params(key, cin, cout, k=3):
    ks = jax.random.split(key, 6)
    return {
        "conv_w": 0.1 * jax.random.normal(ks[0], (cout, cin, k, k, k), jnp.float32),
        "conv_b": 0.05 * jax.random.normal(ks[1], (cout,), jnp.float32),
        "bn_gamma": 1.0 + 0.1 * jax.random.normal(ks[2], (cout,), jnp.float32),
        "bn_beta": 0.05 * jax.random.normal(ks[3], (cout,), jnp.float32),
        "bn_mean": 0.1 * jax.random.normal(ks[4], (cout,), jnp.float32),
        "bn_var": 0.5 + 0.5 * jnp.abs(jax.random.normal(ks[5], (cout,), jnp.float32)),
    }


if __name__ == "__main__":
    N, C, D, H, W = 2, 4, 4, 16, 16      # Conv3d(cin=4, cout=4, k=3, s=1, p=1, residual)
    key = jax.random.PRNGKey(0)
    kx, kp = jax.random.split(key)

    x = jax.random.normal(kx, (N, C, D, H, W), dtype=jnp.float32)
    params = init_params(kp, C, C, k=3)

    out = jax.block_until_ready(
        conv3d_bn_relu(x, params, stride=1, padding=1, residual=True))
    ref = jax.block_until_ready(
        conv3d_bn_relu_ref(x, params, stride=1, padding=1, residual=True))

    assert out.shape == (N, C, D, H, W), out.shape
    # Kernel feeds the MXU with bf16 activations/weights (f32 accumulate), so
    # compare against the exact f32 reference with a bf16-appropriate tolerance.
    max_err = float(jnp.max(jnp.abs(out - ref)))
    mean_err = float(jnp.mean(jnp.abs(out - ref)))
    assert max_err < 6e-2, f"max mismatch vs reference: {max_err}"
    assert mean_err < 1e-2, f"mean mismatch vs reference: {mean_err}"
    print("KERNEL_OK")
</pallas_src>

<mosaic_0001>
module attributes {stable_mosaic.version = 11 : i64} {
  func.func @kernel(%arg0: i32, %arg1: i32, %arg2: memref<1x1x8x512xbf16, #tpu.memory_space<vmem>>, %arg3: memref<1x1x8x512xbf16, #tpu.memory_space<vmem>>, %arg4: memref<1x1x8x512xbf16, #tpu.memory_space<vmem>>, %arg5: memref<8x216xbf16, #tpu.memory_space<vmem>>, %arg6: memref<8x1xf32, #tpu.memory_space<vmem>>, %arg7: memref<1x1x8x384xf32, #tpu.memory_space<vmem>>) attributes {dimension_semantics = [#tpu.dimension_semantics<parallel>, #tpu.dimension_semantics<parallel>], iteration_bounds = array<i64: 2, 4>, scalar_prefetch = 0 : i64, scratch_operands = 0 : i64, tpu.core_type = #tpu.core_type<tc>, window_params = [{transform_indices = @transform_0, window_bounds = array<i64: 1, 1, 8, 512>}, {transform_indices = @transform_1, window_bounds = array<i64: 1, 1, 8, 512>}, {transform_indices = @transform_2, window_bounds = array<i64: 1, 1, 8, 512>}, {pipeline_mode = #tpu.pipeline_mode<synchronous>, transform_indices = @transform_3, window_bounds = array<i64: 8, 216>}, {pipeline_mode = #tpu.pipeline_mode<synchronous>, transform_indices = @transform_4, window_bounds = array<i64: 8, 1>}, {transform_indices = @transform_5, window_bounds = array<i64: 1, 1, 8, 384>}]} {
    %c0 = arith.constant 0 : index
    %c0_0 = arith.constant 0 : index
    %c0_1 = arith.constant 0 : index
    %c0_2 = arith.constant 0 : index
    %0 = vector.load %arg2[%c0, %c0_0, %c0_1, %c0_2] : memref<1x1x8x512xbf16, #tpu.memory_space<vmem>>, vector<1x1x8x512xbf16>
    %1 = vector.shape_cast %0 : vector<1x1x8x512xbf16> to vector<8x512xbf16>
    %2 = vector.extract_strided_slice %1 {offsets = [0, 0], sizes = [8, 384], strides = [1, 1]} : vector<8x512xbf16> to vector<8x384xbf16>
    %3 = vector.extract_strided_slice %1 {offsets = [0, 1], sizes = [8, 384], strides = [1, 1]} : vector<8x512xbf16> to vector<8x384xbf16>
    %4 = vector.extract_strided_slice %1 {offsets = [0, 2], sizes = [8, 384], strides = [1, 1]} : vector<8x512xbf16> to vector<8x384xbf16>
    %5 = vector.extract_strided_slice %1 {offsets = [0, 18], sizes = [8, 384], strides = [1, 1]} : vector<8x512xbf16> to vector<8x384xbf16>
    %6 = vector.extract_strided_slice %1 {offsets = [0, 19], sizes = [8, 384], strides = [1, 1]} : vector<8x512xbf16> to vector<8x384xbf16>
    %7 = vector.extract_strided_slice %1 {offsets = [0, 20], sizes = [8, 384], strides = [1, 1]} : vector<8x512xbf16> to vector<8x384xbf16>
    %8 = vector.extract_strided_slice %1 {offsets = [0, 36], sizes = [8, 384], strides = [1, 1]} : vector<8x512xbf16> to vector<8x384xbf16>
    %9 = vector.extract_strided_slice %1 {offsets = [0, 37], sizes = [8, 384], strides = [1, 1]} : vector<8x512xbf16> to vector<8x384xbf16>
    %10 = vector.extract_strided_slice %1 {offsets = [0, 38], sizes = [8, 384], strides = [1, 1]} : vector<8x512xbf16> to vector<8x384xbf16>
    %c0_3 = arith.constant 0 : index
    %c0_4 = arith.constant 0 : index
    %c0_5 = arith.constant 0 : index
    %c0_6 = arith.constant 0 : index
    %11 = vector.load %arg3[%c0_3, %c0_4, %c0_5, %c0_6] : memref<1x1x8x512xbf16, #tpu.memory_space<vmem>>, vector<1x1x8x512xbf16>
    %12 = vector.shape_cast %11 : vector<1x1x8x512xbf16> to vector<8x512xbf16>
    %13 = vector.extract_strided_slice %12 {offsets = [0, 0], sizes = [8, 384], strides = [1, 1]} : vector<8x512xbf16> to vector<8x384xbf16>
    %14 = vector.extract_strided_slice %12 {offsets = [0, 1], sizes = [8, 384], strides = [1, 1]} : vector<8x512xbf16> to vector<8x384xbf16>
    %15 = vector.extract_strided_slice %12 {offsets = [0, 2], sizes = [8, 384], strides = [1, 1]} : vector<8x512xbf16> to vector<8x384xbf16>
    %16 = vector.extract_strided_slice %12 {offsets = [0, 18], sizes = [8, 384], strides = [1, 1]} : vector<8x512xbf16> to vector<8x384xbf16>
    %17 = vector.extract_strided_slice %12 {offsets = [0, 19], sizes = [8, 384], strides = [1, 1]} : vector<8x512xbf16> to vector<8x384xbf16>
    %18 = vector.extract_strided_slice %12 {offsets = [0, 20], sizes = [8, 384], strides = [1, 1]} : vector<8x512xbf16> to vector<8x384xbf16>
    %19 = vector.extract_strided_slice %12 {offsets = [0, 36], sizes = [8, 384], strides = [1, 1]} : vector<8x512xbf16> to vector<8x384xbf16>
    %20 = vector.extract_strided_slice %12 {offsets = [0, 37], sizes = [8, 384], strides = [1, 1]} : vector<8x512xbf16> to vector<8x384xbf16>
    %21 = vector.extract_strided_slice %12 {offsets = [0, 38], sizes = [8, 384], strides = [1, 1]} : vector<8x512xbf16> to vector<8x384xbf16>
    %c0_7 = arith.constant 0 : index
    %c0_8 = arith.constant 0 : index
    %c0_9 = arith.constant 0 : index
    %c0_10 = arith.constant 0 : index
    %22 = vector.load %arg4[%c0_7, %c0_8, %c0_9, %c0_10] : memref<1x1x8x512xbf16, #tpu.memory_space<vmem>>, vector<1x1x8x512xbf16>
    %23 = vector.shape_cast %22 : vector<1x1x8x512xbf16> to vector<8x512xbf16>
    %24 = vector.extract_strided_slice %23 {offsets = [0, 0], sizes = [8, 384], strides = [1, 1]} : vector<8x512xbf16> to vector<8x384xbf16>
    %25 = vector.extract_strided_slice %23 {offsets = [0, 1], sizes = [8, 384], strides = [1, 1]} : vector<8x512xbf16> to vector<8x384xbf16>
    %26 = vector.extract_strided_slice %23 {offsets = [0, 2], sizes = [8, 384], strides = [1, 1]} : vector<8x512xbf16> to vector<8x384xbf16>
    %27 = vector.extract_strided_slice %23 {offsets = [0, 18], sizes = [8, 384], strides = [1, 1]} : vector<8x512xbf16> to vector<8x384xbf16>
    %28 = vector.extract_strided_slice %23 {offsets = [0, 19], sizes = [8, 384], strides = [1, 1]} : vector<8x512xbf16> to vector<8x384xbf16>
    %29 = vector.extract_strided_slice %23 {offsets = [0, 20], sizes = [8, 384], strides = [1, 1]} : vector<8x512xbf16> to vector<8x384xbf16>
    %30 = vector.extract_strided_slice %23 {offsets = [0, 36], sizes = [8, 384], strides = [1, 1]} : vector<8x512xbf16> to vector<8x384xbf16>
    %31 = vector.extract_strided_slice %23 {offsets = [0, 37], sizes = [8, 384], strides = [1, 1]} : vector<8x512xbf16> to vector<8x384xbf16>
    %32 = vector.extract_strided_slice %23 {offsets = [0, 38], sizes = [8, 384], strides = [1, 1]} : vector<8x512xbf16> to vector<8x384xbf16>
    %33 = tpu.concatenate %2, %3, %4, %5, %6, %7, %8, %9, %10, %13, %14, %15, %16, %17, %18, %19 in 0 : vector<8x384xbf16>, vector<8x384xbf16>, vector<8x384xbf16>, vector<8x384xbf16>, vector<8x384xbf16>, vector<8x384xbf16>, vector<8x384xbf16>, vector<8x384xbf16>, vector<8x384xbf16>, vector<8x384xbf16>, vector<8x384xbf16>, vector<8x384xbf16>, vector<8x384xbf16>, vector<8x384xbf16>, vector<8x384xbf16>, vector<8x384xbf16> -> vector<128x384xbf16>
    %34 = tpu.concatenate %20, %21, %24, %25, %26, %27, %28, %29, %30, %31, %32 in 0 : vector<8x384xbf16>, vector<8x384xbf16>, vector<8x384xbf16>, vector<8x384xbf16>, vector<8x384xbf16>, vector<8x384xbf16>, vector<8x384xbf16>, vector<8x384xbf16>, vector<8x384xbf16>, vector<8x384xbf16>, vector<8x384xbf16> -> vector<88x384xbf16>
    %35 = tpu.concatenate %33, %34 in 0 : vector<128x384xbf16>, vector<88x384xbf16> -> vector<216x384xbf16>
    %c0_11 = arith.constant 0 : index
    %c0_12 = arith.constant 0 : index
    %36 = vector.load %arg5[%c0_11, %c0_12] : memref<8x216xbf16, #tpu.memory_space<vmem>>, vector<8x216xbf16>
    %cst = arith.constant dense<0.000000e+00> : vector<8x384xf32>
    %37 = tpu.matmul %36, %35, %cst {dimension_numbers = #tpu.dot_dimension_numbers<[1], [0], [0], [1], [0, 0, 1, 1], [], []>} : vector<8x216xbf16>, vector<216x384xbf16>, vector<8x384xf32> -> vector<8x384xf32>
    %c0_13 = arith.constant 0 : index
    %c0_14 = arith.constant 0 : index
    %38 = vector.load %arg6[%c0_13, %c0_14] : memref<8x1xf32, #tpu.memory_space<vmem>>, vector<8x1xf32>
    %39 = vector.broadcast %38 : vector<8x1xf32> to vector<8x384xf32>
    %40 = arith.addf %37, %39 : vector<8x384xf32>
    %c0_15 = arith.constant 0 : index
    %c0_16 = arith.constant 0 : index
    %c0_17 = arith.constant 0 : index
    %c19 = arith.constant 19 : index
    %41 = vector.load %arg3[%c0_15, %c0_16, %c0_17, %c19] : memref<1x1x8x512xbf16, #tpu.memory_space<vmem>>, vector<1x1x8x384xbf16>
    %42 = vector.shape_cast %41 : vector<1x1x8x384xbf16> to vector<8x384xbf16>
    %43 = arith.extf %42 : vector<8x384xbf16> to vector<8x384xf32>
    %44 = arith.addf %40, %43 : vector<8x384xf32>
    %cst_18 = arith.constant 0.000000e+00 : f32
    %45 = vector.broadcast %cst_18 : f32 to vector<8x384xf32>
    %46 = arith.maximumf %44, %45 : vector<8x384xf32>
    %c0_19 = arith.constant 0 : index
    %c0_20 = arith.constant 0 : index
    %c0_21 = arith.constant 0 : index
    %c0_22 = arith.constant 0 : index
    %47 = vector.load %arg7[%c0_19, %c0_20, %c0_21, %c0_22] : memref<1x1x8x384xf32, #tpu.memory_space<vmem>>, vector<1x1x8x384xf32>
    %48 = vector.shape_cast %47 : vector<1x1x8x384xf32> to vector<8x384xf32>
    %49 = vector.shape_cast %46 : vector<8x384xf32> to vector<1x1x8x384xf32>
    tpu.vector_store %arg7[%c0_19, %c0_20, %c0_21, %c0_22], %49 {strides = array<i32>} : memref<1x1x8x384xf32, #tpu.memory_space<vmem>>, vector<1x1x8x384xf32>,
    return
  }
  func.func @transform_0(%arg0: i32, %arg1: i32) -> (i32, i32, i32, i32) {
    %c0_i32 = arith.constant 0 : i32
    %0 = arith.addi %arg1, %c0_i32 : i32
    %c0_i32_0 = arith.constant 0 : i32
    %c0_i32_1 = arith.constant 0 : i32
    %c0_i32_2 = arith.constant 0 : i32
    return %arg0, %0, %c0_i32_0, %c0_i32_1 : i32, i32, i32, i32
  }
  func.func @transform_1(%arg0: i32, %arg1: i32) -> (i32, i32, i32, i32) {
    %c1_i32 = arith.constant 1 : i32
    %0 = arith.addi %arg1, %c1_i32 : i32
    %c0_i32 = arith.constant 0 : i32
    %c0_i32_0 = arith.constant 0 : i32
    %c0_i32_1 = arith.constant 0 : i32
    return %arg0, %0, %c0_i32, %c0_i32_0 : i32, i32, i32, i32
  }
  func.func @transform_2(%arg0: i32, %arg1: i32) -> (i32, i32, i32, i32) {
    %c2_i32 = arith.constant 2 : i32
    %0 = arith.addi %arg1, %c2_i32 : i32
    %c0_i32 = arith.constant 0 : i32
    %c0_i32_0 = arith.constant 0 : i32
    %c0_i32_1 = arith.constant 0 : i32
    return %arg0, %0, %c0_i32, %c0_i32_0 : i32, i32, i32, i32
  }
  func.func @transform_3(%arg0: i32, %arg1: i32) -> (i32, i32) {
    %c0_i32 = arith.constant 0 : i32
    %c0_i32_0 = arith.constant 0 : i32
    %c0_i32_1 = arith.constant 0 : i32
    return %c0_i32, %c0_i32_0 : i32, i32
  }
  func.func @transform_4(%arg0: i32, %arg1: i32) -> (i32, i32) {
    %c0_i32 = arith.constant 0 : i32
    %c0_i32_0 = arith.constant 0 : i32
    %c0_i32_1 = arith.constant 0 : i32
    return %c0_i32, %c0_i32_0 : i32, i32
  }
  func.func @transform_5(%arg0: i32, %arg1: i32) -> (i32, i32, i32, i32) {
    %c0_i32 = arith.constant 0 : i32
    %c0_i32_0 = arith.constant 0 : i32
    %c0_i32_1 = arith.constant 0 : i32
    return %arg0, %arg1, %c0_i32, %c0_i32_0 : i32, i32, i32, i32
  }
}

</mosaic_0001>

<bundles_post_ra>
// kernel: tpu_custom_call.1
= control target key start
LH: loop header
LB: loop body
LE: loop exit
PB: predicated region body
PF: predicated region fallthrough
CT: control target
= control target key end

     0   :  { %s2614_s0 = inlined_call_operand.hbm [shape: bf16[2,6,8,512], index: 0, kind: input, shape index: {}]   ;;  %s2615_s1 = inlined_call_operand.hbm [shape: bf16[2,6,8,512], index: 1, kind: input, shape index: {}]   ;;  %s2616_s2 = inlined_call_operand.hbm [shape: bf16[2,6,8,512], index: 2, kind: input, shape index: {}]   ;;  %s2617_s3 = inlined_call_operand.vmem [shape: bf16[8,216], index: 3, kind: input, shape index: {}]   ;;  %s2618_s4 = inlined_call_operand.vmem [shape: f32[8,1], index: 4, kind: input, shape index: {}]   ;;  %s2619_s5 = inlined_call_operand.hbm [shape: f32[2,4,8,384], index: 5, kind: output, shape index: {}]  }
   0x1   :  { %2634 = sst [smem:[#allocation21_spill]] %s2615_s1 }
   0x2   :  { %2635 = sst [smem:[#allocation22_spill]] %s2617_s3 }
   0x3   :  { %2636 = sst [smem:[#allocation23_spill]] %s2618_s4 }
   0x4   :  { %2637 = sst [smem:[#allocation24_spill]] %s2619_s5 }
   0x5   :  { %10 = vsyncpa [#allocation3], 0 }
   0x6   :  { %12 = vsyncpa [#allocation3 + $0x1], 0 }
   0x7   :  { %13 = vsyncpa [#allocation6], 0 }
   0x8   :  { %15 = vsyncpa [#allocation6 + $0x1], 0 }
   0x9   :  { %16 = vsyncpa [#allocation4], 0 }
   0xa   :  { %18 = vsyncpa [#allocation4 + $0x1], 0  ;;  %s1702_s18 = smov 0   ;;  %s1704_s19 = smov 0  }
   0xb   :  { %s1706_s20 = smov 0   ;;  %s1708_s21 = smov 0  }
   0xc   :  { %s1710_s22 = smov 0   ;;  %s1712_s23 = smov 0  }
   0xd   :  { %s1714_s24 = smov 0   ;;  %s1716_s25 = smov 0  }
   0xe   :  { %s1718_s26 = smov 0   ;;  %s1720_s27 = smov 0  }
   0xf   :  { %s1722_s28 = smov 0   ;;  %s1724_s29 = smov 0  }
  0x10   :  { %s1726_s30 = smov 0   ;;  %s1728_s6 = smov 0  }
  0x11 LB: > { %2638 = sst [smem:[#allocation13_spill]] %s1614_s22  ;;  %s1773_s7 = sadd.s32 4294967295, %s1650_s6   ;;  %s1650_s6 = sphi %s1728_s6, %s24_s6   ;;  %s1646_s30 = sphi %s1726_s30, %s2698_s30   ;;  %s1642_s29 = sphi %s1724_s29, %s2697_s29   ;;  %s1638_s28 = sphi %s1722_s28, %s2684_s28   ;;  %s1634_s27 = sphi %s1720_s27, %s2696_s27   ;;  %s1630_s26 = sphi %s1718_s26, %s2695_s26   ;;  %s1626_s25 = sphi %s1716_s25, %s2694_s25   ;;  %s1622_s24 = sphi %s1714_s24, %s2693_s24   ;;  %s1618_s23 = sphi %s1712_s23, %s2692_s23   ;;  %s1614_s22 = sphi %s1710_s22, %s2691_s22   ;;  %s1610_s21 = sphi %s1708_s21, %s2690_s21   ;;  %s1606_s20 = sphi %s1706_s20, %s2689_s20   ;;  %s1602_s19 = sphi %s1704_s19, %s2688_s19   ;;  %s1598_s18 = sphi %s1702_s18, %s2687_s18  }
  0x12   : > { %2639 = sst [smem:[#allocation14_spill]] %s1634_s27  ;;  %s33_s8 = sadd.s32 1, %s1642_s29 }
  0x13   : > { %2640 = sst [smem:[#allocation15_spill]] %s1638_s28  ;;  %p34_p0 = scmp.ge.s32.totalorder %s33_s8, 4 }
  0x14   : > { %2641 = sst [smem:[#allocation16_spill]] %s1646_s30  ;;  %s36_s9 = sadd.s32 1, %s1646_s30 }
  0x15   : > { %p2628_p1 = scmp.eq.s32.totalorder %s1650_s6, 0  ;;  %p2627_p2 = scmp.eq.s32.totalorder %s1773_s7, 0 }
  0x16   : > { %s1779_s10 = scalar_select %p34_p0, 0, %s33_s8  }
  0x17   : > { %s2700_s9 = smov (!%p34_p0, %s36_s9), %s1646_s30  ;;  %s75_s14 = sadd.s32 1, %s1618_s23 }
  0x18   : > { %2642 = sst [smem:[#allocation17_spill]] %s1779_s10  ;;  %s41_s11 = ssub.s32 %s1642_s29, %s1779_s10 }
  0x19   : > { %s69_s12 = sadd.s32 1, %s1779_s10  ;;  %p38_p3 = scmp.ge.s32.totalorder %s2700_s9, 2 }
  0x1a   : > { %s71_s13 = ssub.s32 %s33_s8, %s69_s12  ;;  %p82_p4 = scmp.ne.s32.totalorder %s1618_s23, %s1614_s22 }
  0x1b   : > { %s2702_s9 = smov (%p38_p3, %s2700_s9), 0  ;;  %p88_p6 = scmp.ne.s32.totalorder %s1614_s22, %s1610_s21 }
  0x1c   : > { %2643 = sst [smem:[#allocation18_spill]] %s2702_s9  ;;  %p1792_p5 = por %p82_p4, %p2628_p1 }
  0x1d   : > { %s40_s16 = ssub.s32 %s1646_s30, %s2702_s9  ;;  %s98_s17 = sadd.s32 2, %s1642_s29 }
  0x1e   : > { %s1801_s5 = sor.u32 %s41_s11, %s40_s16  ;;  %s72_s8 = sor.u32 %s71_s13, %s40_s16 }
  0x1f   : > { %p73_p8 = scmp.eq.s32.totalorder %s72_s8, 0  ;;  %p1806_p9 = por %p88_p6, %p2627_p2 }
  0x20   : > { %s99_s28 = sadd.s32 2, %s1779_s10  ;;  %p2626_p10 = scmp.lt.s32.totalorder %s1650_s6, 8 }
  0x21   : > { %s2645_s12 = scalar_select %p1806_p9, 1, 0 }
  0x22   : > { %s1812_s27 = scalar_select %p73_p8, %s1618_s23, %s75_s14  }
  0x23   : > { %2646 = sst [smem:[#allocation19_spill]] %s2645_s12  ;;  %s101_s4 = ssub.s32 %s98_s17, %s99_s28 }
  0x24   : > { %2647 = sst [smem:[#allocation20_spill]] %s1812_s27  ;;  %s102_s21 = sor.u32 %s101_s4, %s40_s16 }
  0x25   : > { %p1815_p11 = scmp.eq.s32.totalorder %s102_s21, 0  ;;  %s1190_s13 = sshll.u32 %s1642_s29, 2 }
  0x26   : > { %s1222_s8 = smul.u32 24, %s1646_s30  ;;  %s239_s9 = sand.u32 1, %s1650_s6  }
  0x27   : > { %s241_s3 = sand.u32 1, %s1618_s23   ;;  %s2649_s1 = sld [smem:[#allocation21_spill]] }
  0x28   : > { %s228_s22 = sadd.s32 %s1222_s8, %s1190_s13  ;;  %s1192_s12 = sshll.u32 %s241_s3, 4 }
  0x29   : > { %s1823_s10 = sshll.u32 %s228_s22, 6  ;;  %s243_s16 = scalar_lea.vmem [#allocation5], %s1192_s12 }
  0x2a   : > { %s254_s17 = sshll.u32 %s243_s16, 4  ;;  %p1837_p12 = pnand %p2626_p10, %p1792_p5  ;;  %s1831_s17 = int_to_ptr.vmem [resolvable:$true] %s254_s17 }
  0x2b   : > { %s1843_s22 = scalar_lea.sflag [#allocation6], %s239_s9 }
  0x2c   : > { %p1406_p4 = pneg %p1837_p12 }
  0x2d   : > { %s1089_s4 = scalar_lea.hbm %s2649_s1, %s1823_s10  ;;  %s1409_s13 = scalar_lea.hbm %s2649_s1, 3072 }
  0x2e   : > { %s1829_s27 = scalar_lea.hbm %s1089_s4, 256  ;;  %s1434_s12 = scalar_lea.hbm %s1089_s4, 512 }
  0x2f   : > { %p1405_p3 = scmp.ne.s32.totalorder %s1829_s27, %s1434_s12  ;;  %p1410_p5 = scmp.lt.u32.totalorder %s1829_s27, %s2649_s1 }
  0x30   : > { %p1411_p10 = scmp.lt.u32.totalorder %s1409_s13, %s1434_s12  ;;  %p1413_p1 = scmp.lt.u32.totalorder %s1434_s12, %s1829_s27 }
  0x31   : > { %p1407_p6 = pnand %p1406_p4, %p1405_p3 }
  0x32   : > { %p1412_p2 = por %p1411_p10, %p1410_p5 }
  0x33   : > { %p1408_p8 = pneg %p1407_p6 }
  0x34   : > { %p1414_p7 = por %p1413_p1, %p1412_p2 }
  0x36   : > { %p1415_p13 = pnand %p1414_p7, %p1408_p8 }
  0x38   : > { %1418 = shalt.err (!%p1415_p13)
}
  0x39   : > { %s1419_s9 = scalar_lea.vmem %s1831_s17, 256  ;;  %s1652_s14 = smov [#allocation5]  }
  0x3a   : > { %p1420_p3 = scmp.ne.s32.totalorder %s1831_s17, %s1419_s9  ;;  %s1424_s4 = sshll.u32 %s1652_s14, 4  ;;  %s1425_s4 = int_to_ptr.vmem [resolvable:$false] %s1424_s4 }
  0x3b   : > { %s1426_s16 = scalar_lea.vmem %s1425_s4, 512  ;;  %p1427_p9 = scmp.lt.s32.totalorder %s1831_s17, %s1425_s4 }
  0x3c   : > { %p1422_p6 = pnand %p1420_p3, %p1406_p4  ;;  %p1428_p10 = scmp.lt.s32.totalorder %s1426_s16, %s1419_s9 }
  0x3e   : > { %p1423_p0 = pneg %p1422_p6  ;;  %p1429_p5 = por %p1428_p10, %p1427_p9 }
  0x40   : > { %p1430_p1 = pnand %p1429_p5, %p1423_p0 }
  0x42   : > { %1433 = shalt.err (!%p1430_p1)
}
  0x43   : > { %1240 = dma.hbm_to_vmem [thread:$0]  (!%p1837_p12), %s1829_s27, 256, %s1831_s17, %s1843_s22  }
  0x44   : > { %p2651_p2 = scmp.lt.s32.totalorder %s1650_s6, 9  ;;  %p2652_p7 = scmp.ge.s32.totalorder %s1650_s6, 1 }
  0x45   : > { %s1186_s12 = sadd.s32 4294967294, %s1650_s6   ;;  %s45_s15 = sadd.s32 1, %s1630_s26 }
  0x46   : > { %p1874_p9 = pnand %p2652_p7, %p2651_p2  ;;  %p52_p13 = scmp.ne.s32.totalorder %s1630_s26, %s1626_s25 }
  0x47   : > { %p2654_p0 = scmp.eq.s32.totalorder %s1801_s5, 0  ;;  %p2655_p4 = scmp.eq.s32.totalorder %s1650_s6, 0 }
  0x48   : > { %s2653_s3 = scalar_select %p1874_p9, 1, 0 }
  0x49   : > { %s1885_s21 = scalar_select %p2654_p0, %s1630_s26, %s45_s15  }
  0x4a   : > { %p54_p8 = por %p2655_p4, %p52_p13  ;;  %p58_p3 = scmp.ne.s32.totalorder %s1626_s25, %s1622_s24 }
  0x4b   : > { %p186_p6 = scmp.eq.s32.totalorder %s1773_s7, 7  ;;  %p192_p10 = scmp.eq.s32.totalorder %s1186_s12, 7 }
  0x4c   : > { %p2656_p5 = scmp.eq.s32.totalorder %s1773_s7, 0  ;;  %s218_s17 = sand.u32 1, %s1630_s26  }
  0x4d   : > { %p1899_p1 = por %p186_p6, %p52_p13  ;;  %p1903_p2 = por %p192_p10, %p58_p3 }
  0x4e   : > { %p1894_p12 = por %p2656_p5, %p58_p3  ;;  %s1189_s5 = sshll.u32 %s218_s17, 4 }
  0x4f   : > { %s2658_s13 = scalar_select %p1899_p1, 1, 0 }
  0x50   : > { %s2657_s27 = scalar_select %p1894_p12, 1, 0 }
  0x51   : > { %s2659_s8 = scalar_select %p1903_p2, 1, 0 }
  0x52   : > { %s1911_s14 = scalar_lea.hbm %s2614_s0, %s1823_s10  ;;  %s222_s4 = scalar_lea.vmem [#allocation2], %s1189_s5 }
  0x53   : > { %s232_s16 = sshll.u32 %s222_s4, 4  ;;  %p2660_p7 = scmp.lt.s32.totalorder %s1650_s6, 8  ;;  %s1919_s16 = int_to_ptr.vmem [resolvable:$true] %s232_s16 }
  0x54   : > { %s219_s15 = scalar_lea.sflag [#allocation3], %s218_s17  ;;  %s1435_s1 = scalar_lea.hbm %s1911_s14, 256 }
  0x55   : > { %p1915_p13 = pnand %p2660_p7, %p54_p8  ;;  %p1436_p0 = scmp.ne.s32.totalorder %s1911_s14, %s1435_s1 }
  0x56   : > { %s1440_s9 = scalar_lea.hbm %s2614_s0, 3072  ;;  %p1441_p8 = scmp.lt.u32.totalorder %s1911_s14, %s2614_s0 }
  0x57   : > { %p1437_p4 = pneg %p1915_p13  ;;  %p1442_p10 = scmp.lt.u32.totalorder %s1440_s9, %s1435_s1 }
  0x58   : > { %p1444_p7 = scmp.lt.u32.totalorder %s1435_s1, %s1911_s14 }
  0x59   : > { %p1438_p3 = pnand %p1437_p4, %p1436_p0  ;;  %p1443_p5 = por %p1442_p10, %p1441_p8 }
  0x5b   : > { %p1439_p6 = pneg %p1438_p3  ;;  %p1445_p2 = por %p1444_p7, %p1443_p5 }
  0x5d   : > { %p1446_p1 = pnand %p1445_p2, %p1439_p6 }
  0x5f   : > { %1449 = shalt.err (!%p1446_p1)
}
  0x60   : > { %s1450_s17 = scalar_lea.vmem %s1919_s16, 256  ;;  %s1653_s5 = smov [#allocation2]  }
  0x61   : > { %p1451_p0 = scmp.ne.s32.totalorder %s1919_s16, %s1450_s17  ;;  %s1455_s28 = sshll.u32 %s1653_s5, 4  ;;  %s1456_s28 = int_to_ptr.vmem [resolvable:$false] %s1455_s28 }
  0x62   : > { %s1457_s30 = scalar_lea.vmem %s1456_s28, 512  ;;  %p1458_p9 = scmp.lt.s32.totalorder %s1919_s16, %s1456_s28 }
  0x63   : > { %p1453_p3 = pnand %p1451_p0, %p1437_p4  ;;  %p1459_p8 = scmp.lt.s32.totalorder %s1457_s30, %s1450_s17 }
  0x65   : > { %p1454_p12 = pneg %p1453_p3  ;;  %p1460_p10 = por %p1459_p8, %p1458_p9 }
  0x67   : > { %p1461_p5 = pnand %p1460_p10, %p1454_p12 }
  0x69   : > { %1464 = shalt.err (!%p1461_p5)
}
  0x6a   : > { %1237 = dma.hbm_to_vmem [thread:$0]  (!%p1915_p13), %s1911_s14, 256, %s1919_s16, %s219_s15  }
  0x6b   : > { %s105_s1 = sadd.s32 1, %s1606_s20  ;;  %p112_p9 = scmp.ne.s32.totalorder %s1606_s20, %s1602_s19 }
  0x6c   : > { %s1952_s9 = scalar_select %p1815_p11, %s1606_s20, %s105_s1  }
  0x6d   : > { %p2662_p12 = scmp.eq.s32.totalorder %s1650_s6, 0  ;;  %p118_p2 = scmp.ne.s32.totalorder %s1602_s19, %s1598_s18 }
  0x6e   : > { %s263_s12 = sand.u32 1, %s1606_s20   ;;  %s1098_s5 = scalar_lea.hbm %s2616_s2, %s1823_s10 }
  0x6f   : > { %p114_p1 = por %p112_p9, %p2662_p12  ;;  %p2663_p4 = scmp.eq.s32.totalorder %s1773_s7, 0 }
  0x70   : > { %s1195_s30 = sshll.u32 %s263_s12, 4  ;;  %s1969_s14 = scalar_lea.hbm %s1098_s5, 512 }
  0x71   : > { %p1965_p6 = por %p118_p2, %p2663_p4  ;;  %s265_s11 = scalar_lea.vmem [#allocation7], %s1195_s30 }
  0x72   : > { %s276_s16 = sshll.u32 %s265_s11, 4  ;;  %p2665_p11 = scmp.lt.s32.totalorder %s1650_s6, 8  ;;  %s277_s16 = int_to_ptr.vmem [resolvable:$true] %s276_s16 }
  0x73   : > { %s2664_s28 = scalar_select %p1965_p6, 1, 0 }
  0x74   : > { %p1973_p13 = pnand %p2665_p11, %p114_p1  ;;  %s1495_s10 = scalar_lea.hbm %s1098_s5, 768 }
  0x75   : > { %p1466_p7 = scmp.ne.s32.totalorder %s1969_s14, %s1495_s10  ;;  %s1470_s12 = scalar_lea.hbm %s2616_s2, 3072 }
  0x76   : > { %p1467_p0 = pneg %p1973_p13  ;;  %p1471_p10 = scmp.lt.u32.totalorder %s1969_s14, %s2616_s2 }
  0x77   : > { %p1472_p5 = scmp.lt.u32.totalorder %s1470_s12, %s1495_s10  ;;  %p1474_p12 = scmp.lt.u32.totalorder %s1495_s10, %s1969_s14 }
  0x78   : > { %p1468_p3 = pnand %p1467_p0, %p1466_p7 }
  0x79   : > { %p1473_p9 = por %p1472_p5, %p1471_p10 }
  0x7a   : > { %p1469_p8 = pneg %p1468_p3 }
  0x7b   : > { %p1475_p1 = por %p1474_p12, %p1473_p9 }
  0x7d   : > { %p1476_p2 = pnand %p1475_p1, %p1469_p8 }
  0x7f   : > { %1479 = shalt.err (!%p1476_p2)
}
  0x80   : > { %s1480_s5 = scalar_lea.vmem %s277_s16, 256  ;;  %s1654_s30 = smov [#allocation7]  }
  0x81   : > { %p1481_p4 = scmp.ne.s32.totalorder %s277_s16, %s1480_s5  ;;  %s1485_s11 = sshll.u32 %s1654_s30, 4  ;;  %s1486_s11 = int_to_ptr.vmem [resolvable:$false] %s1485_s11 }
  0x82   : > { %s1487_s15 = scalar_lea.vmem %s1486_s11, 512  ;;  %p1488_p3 = scmp.lt.s32.totalorder %s277_s16, %s1486_s11 }
  0x83   : > { %p1483_p11 = pnand %p1481_p4, %p1467_p0  ;;  %p1489_p6 = scmp.lt.s32.totalorder %s1487_s15, %s1480_s5 }
  0x85   : > { %p1484_p7 = pneg %p1483_p11  ;;  %p1490_p5 = por %p1489_p6, %p1488_p3 }
  0x87   : > { %p1491_p10 = pnand %p1490_p5, %p1484_p7 }
  0x89   : > { %1494 = shalt.err (!%p1491_p10)
}
  0x8a   : > { %1243 = dma.hbm_to_vmem [thread:$0]  (!%p1973_p13), %s1969_s14, 256, %s277_s16, %s1843_s22  }
  0x8b   : > { %p2667_p8 = scmp.ne.s32.totalorder %s2653_s3, 0 }
  0x8c   : > { %s2001_s10 = sand.u32 (!%p2667_p8), 1, %s1626_s25   ;;  %p2668_p6 = scmp.ne.s32.totalorder (!%p2667_p8), %s2657_s27, 0 }
  0x8d   : > { %285 = sbr.rel (%p2667_p8) target bundleno = 738 (0x2e2), region = 40  ;;  %s1199_s1 = sshll.u32 (!%p2667_p8), %s2001_s10, 4 }
  0x8e   : > { %s288_s12 = scalar_lea.sflag (!%p2667_p8), [#allocation3], %s2001_s10  ;;  %s2005_s4 = scalar_lea.vmem (!%p2667_p8), [#allocation2], %s1199_s1 }
  0x94   : > { %1581 = dma.done.wait (%p2668_p6), %s288_s12, 256  }
  0x95   : > { %1583 = vsyncadd (%p2668_p6), %s288_s12, 4294967040  ;;  %s2669_s22 = sld [smem:[#allocation13_spill]]  ;;  %s2670_s14 = sld [smem:[#allocation19_spill]] }
  0x96   : > { %s296_s3 = sand.u32 1, %s1773_s7  }
  0x97   : > { %s297_s17 = scalar_lea.sflag [#allocation6], %s296_s3 }
  0x9b   : > { %s298_s16 = sand.u32 1, %s2669_s22   ;;  %p2671_p13 = scmp.ne.s32.totalorder %s2670_s14, 0 }
  0x9c   : > { %s1200_s18 = sshll.u32 %s298_s16, 4 }
  0x9d   : > { %s300_s5 = scalar_lea.vmem [#allocation5], %s1200_s18 }
  0x9e   : > { %1585 = dma.done.wait (%p2671_p13), %s297_s17, 256  }
  0x9f   : > { %1587 = vsyncadd (%p2671_p13), %s297_s17, 4294967040  ;;  %s307_s30 = sand.u32 1, %s1602_s19   ;;  %p2672_p0 = scmp.ne.s32.totalorder %s2664_s28, 0 }
  0xa0   : > { %s1201_s11 = sshll.u32 %s307_s30, 4 }
  0xa1   : > { %s309_s15 = scalar_lea.vmem [#allocation7], %s1201_s11 }
  0xa2   : > { %1589 = dma.done.wait (%p2672_p0), %s297_s17, 256  }
  0xa3   : > { %1591 = vsyncadd (%p2672_p0), %s297_s17, 4294967040  ;;  %v2022_v0 = vld [vmem:[%s300_s5 + $0x8] sm:$0xff]  ;;  %v2024_v1 = vld [vmem:[%s300_s5] sm:$0xff]  ;;  %s1655_s7 = smov 127   ;;  %s1656_s27 = smov 37   ;;  %v1663_v15 = vmov 0  }
  0xa4   : > { %v2028_v2 = vcombine.high %v2022_v0, %v2022_v0  ;;  %v2032_v3 = vcombine.high %v2024_v1, %v2024_v1  ;;  %v2040_v4 = vcombine.low %v2022_v0, %v2022_v0  ;;  %v2044_v5 = vcombine.low %v2024_v1, %v2024_v1  ;;  %v353_v6 = vld [vmem:[%s309_s15] sm:$0xff]  ;;  %v354_v9 = vld [vmem:[%s309_s15 + $0x8] sm:$0xff]  ;;  %s1657_s28 = smov 36   ;;  %s1658_s1 = smov 35   ;;  %958 = vmatprep.subr.bf16.mxu1 %v1663_v15 }
  0xa5   : > { %v2050_v7 = vcombine.low %v353_v6, %v353_v6  ;;  %v2052_v8 = vcombine.high %v353_v6, %v353_v6  ;;  %v2056_v10 = vcombine.low %v354_v9, %v354_v9  ;;  %v2062_v11 = vcombine.high %v354_v9, %v354_v9  ;;  %s1659_s12 = smov 19   ;;  %s1660_s22 = smov 18   ;;  %v349_v12 = vld [vmem:[%s2005_s4] sm:$0xff]  ;;  %v350_v14 = vld [vmem:[%s2005_s4 + $0x8] sm:$0xff]  ;;  %1378 = vset.pattern.permute.xlu1 %v1663_v15 }
  0xa6   : > { %477 = vrot.lane.b32.xlu1 %v2028_v2, %s1655_s7  ;;  %473 = vrot.lane.b32.xlu0 %v2032_v3, %s1655_s7  ;;  %s1661_s14 = smov 17   ;;  %s1662_s3 = smov 1   ;;  %v2092_v13 = vcombine.high %v349_v12, %v349_v12  ;;  %v2102_v16 = vcombine.low %v350_v14, %v350_v14  ;;  %v2104_v17 = vcombine.low %v349_v12, %v349_v12  ;;  %vm373_vm0 = vcmask 1039360  }
  0xa7   : > { %1389 = vset.pattern.permute.xlu0 %v1663_v15  ;;  %v1205_v18 = vcombine.high %v350_v14, %v350_v14  ;;  %s1664_s4 = smov 126   ;;  %s1665_s16 = smov 110   ;;  %vm537_vm1 = vcmask 1043456   ;;  %vm661_vm2 = vcmask 293888   ;;  %vm648_vm3 = vcmask 302080  }
  0xa8   : > { %s1666_s18 = smov 109   ;;  %s1667_s17 = smov 108   ;;  %vm685_vm4 = vcmask 154624   ;;  %vm673_vm5 = vcmask 285696   ;;  %vm709_vm6 = vcmask 138240   ;;  %vm697_vm7 = vcmask 146432  }
  0xa9   : > { %s1668_s5 = smov 92   ;;  %s1669_s30 = smov 91   ;;  %vm385_vm8 = vcmask 1031168   ;;  %vm397_vm9 = vcmask 900096   ;;  %vm721_vm10 = vcmask 7168   ;;  %vm904_vm11 = vcmask 719872  }
  0xaa   : > { %475 = vrot.lane.b32.xlu0 %v2040_v4, %s1655_s7  ;;  %471 = vrot.lane.b32.xlu1 %v2044_v5, %s1655_s7  ;;  %s1670_s11 = smov 90   ;;  %vm409_vm12 = vcmask 891904   ;;  %vm421_vm13 = vcmask 883712   ;;  %vm433_vm14 = vcmask 752640   ;;  %vm445_vm15 = vcmask 744448   ;;  %p2678_p12 = scmp.ne.s32.totalorder %s2658_s13, 0 }
  0xae   : > { %642 = vrot.lane.b32.xlu0 %v2050_v7, %s1656_s27  ;;  %644 = vrot.lane.b32.xlu1 %v2052_v8, %s1656_s27 }
  0xb2   : > { %646 = vrot.lane.b32.xlu0 %v2056_v10, %s1656_s27  ;;  %653 = vrot.lane.b32.xlu1 %v2050_v7, %s1657_s28  ;;  %s2673_s27 = sld [smem:[#allocation22_spill]] }
  0xb6   : > { %655 = vrot.lane.b32.xlu0 %v2052_v8, %s1657_s28  ;;  %657 = vrot.lane.b32.xlu1 %v2056_v10, %s1657_s28 }
  0xba   : > { %659 = vrot.lane.b32.xlu0 %v2062_v11, %s1657_s28  ;;  %665 = vrot.lane.b32.xlu1 %v2050_v7, %s1658_s1  ;;  %s1031_s28 = scalar_lea.sflag [#allocation4], %s2001_s10 }
  0xbe   : > { %667 = vrot.lane.b32.xlu0 %v2052_v8, %s1658_s1  ;;  %669 = vrot.lane.b32.xlu1 %v2056_v10, %s1658_s1 }
  0xc2   : > { %677 = vrot.lane.b32.xlu0 %v2050_v7, %s1659_s12  ;;  %679 = vrot.lane.b32.xlu1 %v2052_v8, %s1659_s12 }
  0xc6   : > { %681 = vrot.lane.b32.xlu0 %v2056_v10, %s1659_s12  ;;  %671 = vrot.lane.b32.xlu1 %v2062_v11, %s1658_s1 }
  0xca   : > { %683 = vrot.lane.b32.xlu0 %v2062_v11, %s1659_s12  ;;  %689 = vrot.lane.b32.xlu1 %v2050_v7, %s1660_s22  ;;  %s2674_s12 = sld [smem:[#allocation23_spill]] }
  0xce   : > { %691 = vrot.lane.b32.xlu0 %v2052_v8, %s1660_s22  ;;  %693 = vrot.lane.b32.xlu1 %v2056_v10, %s1660_s22 }
  0xd2   : > { %701 = vrot.lane.b32.xlu0 %v2050_v7, %s1661_s14  ;;  %703 = vrot.lane.b32.xlu1 %v2052_v8, %s1661_s14 }
  0xd6   : > { %705 = vrot.lane.b32.xlu0 %v2056_v10, %s1661_s14  ;;  %695 = vrot.lane.b32.xlu1 %v2062_v11, %s1660_s22  ;;  %s2675_s22 = sld [smem:[#allocation14_spill]] }
  0xda   : > { %707 = vrot.lane.b32.xlu0 %v2062_v11, %s1661_s14  ;;  %713 = vrot.lane.b32.xlu1 %v2050_v7, %s1662_s3  ;;  %s2676_s14 = sld [smem:[#allocation15_spill]] }
  0xde   : > { %715 = vrot.lane.b32.xlu0 %v2052_v8, %s1662_s3  ;;  %717 = vrot.lane.b32.xlu1 %v2056_v10, %s1662_s3 }
  0xe2   : > { %719 = vrot.lane.b32.xlu0 %v2062_v11, %s1662_s3  ;;  %725 = vrot.lane.b32.xlu1 %v2050_v7, %s1655_s7  ;;  %s1224_s3 = smul.u32 3, %s2675_s22 }
  0xe6   : > { %727 = vrot.lane.b32.xlu0 %v2052_v8, %s1655_s7  ;;  %729 = vrot.lane.b32.xlu1 %v2056_v10, %s1655_s7 }
  0xea   : > { %731 = vrot.lane.b32.xlu0 %v2062_v11, %s1655_s7  ;;  %367 = vrot.lane.b32.xlu1 %v2092_v13, %s1655_s7 }
  0xee   : > { %369 = vrot.lane.b32.xlu0 %v2102_v16, %s1655_s7  ;;  %365 = vrot.lane.b32.xlu1 %v2104_v17, %s1655_s7 }
  0xf2   : > { %371 = vrot.lane.b32.xlu0 %v1205_v18, %s1655_s7  ;;  %379 = vrot.lane.b32.xlu1 %v2092_v13, %s1664_s4  ;;  %s2677_s7 = sld [smem:[#allocation24_spill]] }
  0xf6   : > { %381 = vrot.lane.b32.xlu0 %v2102_v16, %s1664_s4  ;;  %391 = vrot.lane.b32.xlu1 %v2092_v13, %s1665_s16 }
  0xfa   : > { %393 = vrot.lane.b32.xlu0 %v2102_v16, %s1665_s16  ;;  %377 = vrot.lane.b32.xlu1 %v2104_v17, %s1664_s4 }
  0xfe   : > { %389 = vrot.lane.b32.xlu0 %v2104_v17, %s1665_s16  ;;  %383 = vrot.lane.b32.xlu1 %v1205_v18, %s1664_s4 }
 0x102   : > { %395 = vrot.lane.b32.xlu0 %v1205_v18, %s1665_s16  ;;  %403 = vrot.lane.b32.xlu1 %v2092_v13, %s1666_s18 }
 0x106   : > { %405 = vrot.lane.b32.xlu0 %v2102_v16, %s1666_s18  ;;  %415 = vrot.lane.b32.xlu1 %v2092_v13, %s1667_s17 }
 0x10a   : > { %417 = vrot.lane.b32.xlu0 %v2102_v16, %s1667_s17  ;;  %401 = vrot.lane.b32.xlu1 %v2104_v17, %s1666_s18 }
 0x10e   : > { %413 = vrot.lane.b32.xlu0 %v2104_v17, %s1667_s17  ;;  %407 = vrot.lane.b32.xlu1 %v1205_v18, %s1666_s18 }
 0x112   : > { %419 = vrot.lane.b32.xlu0 %v1205_v18, %s1667_s17  ;;  %427 = vrot.lane.b32.xlu1 %v2092_v13, %s1668_s5 }
 0x116   : > { %429 = vrot.lane.b32.xlu0 %v2102_v16, %s1668_s5  ;;  %439 = vrot.lane.b32.xlu1 %v2092_v13, %s1669_s30 }
 0x118   : > { %v2145_v19 = vpop.permute.xlu1 %477  ;;  %v2147_v20 = vpop.permute.xlu0 %473 }
 0x119   : > { %v741_v61 = vsel %vm537_vm1, %v2028_v2, %v2145_v19 }
 0x11a   : > { %441 = vrot.lane.b32.xlu0 %v2102_v16, %s1669_s30  ;;  %425 = vrot.lane.b32.xlu1 %v2104_v17, %s1668_s5 }
 0x11c   : > { %v476_v21 = vpop.permute.xlu0 %475  ;;  %v472_v22 = vpop.permute.xlu1 %471 }
 0x11d   : > { %v2244_v47 = vsel %vm373_vm0, %v2147_v20, %v476_v21  ;;  %v2259_v51 = vsel %vm373_vm0, %v476_v21, %v2145_v19  ;;  %v2263_v52 = vsel %vm373_vm0, %v472_v22, %v2147_v20 }
 0x11e   : > { %437 = vrot.lane.b32.xlu0 %v2104_v17, %s1669_s30  ;;  %431 = vrot.lane.b32.xlu1 %v1205_v18, %s1668_s5  ;;  %v737_v50 = vsel %vm537_vm1, %v2032_v3, %v2244_v47  ;;  %v738_v55 = vsel %vm537_vm1, %v2040_v4, %v2259_v51  ;;  %v736_v56 = vsel %vm537_vm1, %v2044_v5, %v2263_v52 }
 0x120   : > { %v2156_v23 = vpop.permute.xlu0 %642  ;;  %v2158_v24 = vpop.permute.xlu1 %644 }
 0x121   : > { %v649_v58 = vsel %vm648_vm3, %v2156_v23, %v2158_v24 }
 0x122   : > { %443 = vrot.lane.b32.xlu0 %v1205_v18, %s1669_s30  ;;  %451 = vrot.lane.b32.xlu1 %v2092_v13, %s1670_s11 }
 0x124   : > { %v2162_v25 = vpop.permute.xlu0 %646  ;;  %v2164_v26 = vpop.permute.xlu1 %653 }
 0x125   : > { %v650_v6 = vsel %vm648_vm3, %v2158_v24, %v2162_v25  ;;  %v744_v14 = vsel %vm537_vm1, %v2156_v23, %v2164_v26 }
 0x126   : > { %453 = vrot.lane.b32.xlu0 %v2102_v16, %s1670_s11  ;;  %449 = vrot.lane.b32.xlu1 %v2104_v17, %s1670_s11 }
 0x128   : > { %v2168_v27 = vpop.permute.xlu0 %655  ;;  %v2170_v28 = vpop.permute.xlu1 %657 }
 0x129   : > { %v662_v57 = vsel %vm661_vm2, %v2164_v26, %v2168_v27  ;;  %v663_v63 = vsel %vm661_vm2, %v2168_v27, %v2170_v28 }
 0x12a   : > { %455 = vrot.lane.b32.xlu0 %v1205_v18, %s1670_s11  ;;  %484 = vrot.lane.b32.xlu1 %v2032_v3, %s1664_s4  ;;  %v747_v62 = vsel %vm537_vm1, %v649_v58, %v662_v57 }
 0x12c   : > { %v2174_v29 = vpop.permute.xlu0 %659  ;;  %v2176_v30 = vpop.permute.xlu1 %665 }
 0x12d   : > { %v664_v18 = vsel %vm661_vm2, %v2170_v28, %v2174_v29 }
 0x12e   : > { %486 = vrot.lane.b32.xlu0 %v2040_v4, %s1664_s4  ;;  %482 = vrot.lane.b32.xlu1 %v2044_v5, %s1664_s4  ;;  %v753_v26 = vsel %vm537_vm1, %v2162_v25, %v664_v18 }
 0x130   : > { %v2182_v31 = vpop.permute.xlu0 %667  ;;  %v2184_v32 = vpop.permute.xlu1 %669 }
 0x131   : > { %v674_v20 = vsel %vm673_vm5, %v2176_v30, %v2182_v31  ;;  %v675_v25 = vsel %vm673_vm5, %v2182_v31, %v2184_v32 }
 0x132   : > { %488 = vrot.lane.b32.xlu0 %v2028_v2, %s1664_s4  ;;  %495 = vrot.lane.b32.xlu1 %v2032_v3, %s1665_s16  ;;  %s1225_s4 = smul.u32 12, %s2676_s14 }
 0x134   : > { %v2190_v33 = vpop.permute.xlu0 %677  ;;  %v2192_v34 = vpop.permute.xlu1 %679 }
 0x135   : > { %v686_v19 = vsel %vm685_vm4, %v2190_v33, %v2192_v34 }
 0x136   : > { %497 = vrot.lane.b32.xlu0 %v2040_v4, %s1665_s16  ;;  %506 = vrot.lane.b32.xlu1 %v2032_v3, %s1666_s18  ;;  %v759_v27 = vsel %vm537_vm1, %v674_v20, %v686_v19 }
 0x138   : > { %v2198_v35 = vpop.permute.xlu0 %681  ;;  %v2200_v36 = vpop.permute.xlu1 %671 }
 0x139   : > { %v687_v28 = vsel %vm685_vm4, %v2192_v34, %v2198_v35 }
 0x13a   : > { %508 = vrot.lane.b32.xlu0 %v2040_v4, %s1666_s18  ;;  %493 = vrot.lane.b32.xlu1 %v2044_v5, %s1665_s16  ;;  %v762_v57 = vsel %vm537_vm1, %v675_v25, %v687_v28 }
 0x13c   : > { %v2206_v37 = vpop.permute.xlu0 %683  ;;  %v2208_v38 = vpop.permute.xlu1 %689 }
 0x13e   : > { %504 = vrot.lane.b32.xlu0 %v2044_v5, %s1666_s18  ;;  %499 = vrot.lane.b32.xlu1 %v2028_v2, %s1665_s16  ;;  %s1223_s16 = smul.u32 24, %s2001_s10 }
 0x140   : > { %v2214_v39 = vpop.permute.xlu0 %691  ;;  %v2216_v40 = vpop.permute.xlu1 %693 }
 0x142   : > { %510 = vrot.lane.b32.xlu0 %v2028_v2, %s1666_s18  ;;  %517 = vrot.lane.b32.xlu1 %v2032_v3, %s1667_s17 }
 0x144   : > { %v2222_v41 = vpop.permute.xlu0 %701  ;;  %v2224_v42 = vpop.permute.xlu1 %703 }
 0x145   : > { %v710_v31 = vsel %vm709_vm6, %v2222_v41, %v2224_v42 }
 0x146   : > { %519 = vrot.lane.b32.xlu0 %v2040_v4, %s1667_s17  ;;  %528 = vrot.lane.b32.xlu1 %v2032_v3, %s1668_s5 }
 0x148   : > { %v2230_v43 = vpop.permute.xlu0 %705  ;;  %v2232_v44 = vpop.permute.xlu1 %695 }
 0x14a   : > { %530 = vrot.lane.b32.xlu0 %v2040_v4, %s1668_s5  ;;  %515 = vrot.lane.b32.xlu1 %v2044_v5, %s1667_s17 }
 0x14c   : > { %v2238_v45 = vpop.permute.xlu0 %707  ;;  %v2240_v46 = vpop.permute.xlu1 %713 }
 0x14e   : > { %526 = vrot.lane.b32.xlu0 %v2044_v5, %s1668_s5  ;;  %521 = vrot.lane.b32.xlu1 %v2028_v2, %s1667_s17 }
 0x150   : > { %v2250_v48 = vpop.permute.xlu0 %715  ;;  %v2252_v49 = vpop.permute.xlu1 %717 }
 0x152   : > { %532 = vrot.lane.b32.xlu0 %v2028_v2, %s1668_s5  ;;  %812 = vrot.lane.b32.xlu1 %v737_v50, %s1669_s30  ;;  %v750_v2 = vsel %vm537_vm1, %v650_v6, %v663_v63  ;;  %v768_v6 = vsel %vm537_vm1, %v2208_v38, %v2222_v41  ;;  %v700_v41 = vsel %vm697_vm7, %v2216_v40, %v2232_v44  ;;  %v2398_v44 = vld [vmem:[%s2673_s27] sm:$0xff]  ;;  %s345_s5 = scalar_lea.vmem [#allocation8], %s1223_s16 }
 0x154   : > { %v2268_v53 = vpop.permute.xlu0 %719  ;;  %v2270_v54 = vpop.permute.xlu1 %725 }
 0x156   : > { %814 = vrot.lane.b32.xlu0 %v738_v55, %s1669_s30  ;;  %810 = vrot.lane.b32.xlu1 %v736_v56, %s1669_s30 }
 0x158   : > { %v2285_v59 = vpop.permute.xlu0 %727  ;;  %v2287_v60 = vpop.permute.xlu1 %729 }
 0x15a   : > { %816 = vrot.lane.b32.xlu0 %v741_v61, %s1669_s30  ;;  %820 = vrot.lane.b32.xlu1 %v747_v62, %s1669_s30 }
 0x15c   : > { %v2300_v9 = vpop.permute.xlu0 %731  ;;  %v368_v12 = vpop.permute.xlu1 %367 }
 0x15e   : > { %822 = vrot.lane.b32.xlu0 %v750_v2, %s1669_s30  ;;  %818 = vrot.lane.b32.xlu1 %v744_v14, %s1669_s30  ;;  %v712_v14 = vsel %vm709_vm6, %v2230_v43, %v2238_v45 }
 0x15f   : > { %v777_v45 = vsel %vm537_vm1, %v700_v41, %v712_v14 }
 0x160   : > { %v370_v21 = vpop.permute.xlu0 %369  ;;  %v366_v22 = vpop.permute.xlu1 %365 }
 0x161   : > { %v375_v23 = vsel %vm373_vm0, %v368_v12, %v370_v21  ;;  %v374_v24 = vsel %vm373_vm0, %v366_v22, %v368_v12  ;;  %v723_v22 = vsel %vm721_vm10, %v2250_v48, %v2252_v49 }
 0x162   : > { %824 = vrot.lane.b32.xlu0 %v753_v26, %s1669_s30  ;;  %828 = vrot.lane.b32.xlu1 %v759_v27, %s1669_s30  ;;  %v544_v29 = vsel %vm537_vm1, %v2092_v13, %v375_v23  ;;  %v540_v50 = vsel %vm537_vm1, %v2104_v17, %v374_v24  ;;  %v756_v13 = vsel %vm537_vm1, %v2176_v30, %v2190_v33 }
 0x163   : > { %917 = vmatprep.subr.bf16.mxu0 %v544_v29  ;;  %v688_v17 = vsel %vm685_vm4, %v2198_v35, %v2206_v37  ;;  %v676_v30 = vsel %vm673_vm5, %v2184_v32, %v2200_v36  ;;  %v698_v33 = vsel %vm697_vm7, %v2208_v38, %v2214_v39  ;;  %v699_v32 = vsel %vm697_vm7, %v2214_v39, %v2216_v40 }
 0x164   : > { %v372_v55 = vpop.permute.xlu0 %371  ;;  %918 = vmatpush1.bf16.msra.mxu0 %v540_v50  ;;  %v380_v56 = vpop.permute.xlu1 %379  ;;  %v765_v61 = vsel %vm537_vm1, %v676_v30, %v688_v17  ;;  %v771_v62 = vsel %vm537_vm1, %v698_v33, %v710_v31  ;;  %v722_v39 = vsel %vm721_vm10, %v2240_v46, %v2250_v48  ;;  %v1215_v23 = vcombine.high %v2398_v44, %v2398_v44 }
 0x165   : > { %v376_v34 = vsel %vm373_vm0, %v370_v21, %v372_v55  ;;  %v783_v21 = vsel %vm537_vm1, %v722_v39, %v2052_v8  ;;  %v780_v8 = vsel %vm537_vm1, %v2240_v46, %v2050_v7  ;;  %v786_v28 = vsel %vm537_vm1, %v723_v22, %v2056_v10 }
 0x166   : > { %830 = vrot.lane.b32.xlu0 %v762_v57, %s1669_s30  ;;  %826 = vrot.lane.b32.xlu1 %v756_v13, %s1669_s30  ;;  %v548_v58 = vsel %vm537_vm1, %v2102_v16, %v376_v34  ;;  %v711_v16 = vsel %vm709_vm6, %v2224_v42, %v2230_v43  ;;  %v724_v29 = vsel %vm721_vm10, %v2252_v49, %v2268_v53  ;;  %v998_v34 = vunpack.c.l.bf16 %v2024_v1 }
 0x167   : > { %959 = vmatpush1.bf16.msra.mxu1 %v548_v58  ;;  %v774_v2 = vsel %vm537_vm1, %v699_v32, %v711_v16  ;;  %1217 = vmatprep.mubr.msk.bf16.mxu0 %vm904_vm11, %v1215_v23  ;;  %v733_v10 = vsel %vm373_vm0, %v2270_v54, %v2285_v59  ;;  %v789_v25 = vsel %vm537_vm1, %v724_v29, %v2062_v11  ;;  %v1000_v13 = vunpack.c.l.bf16 %v2022_v0 }
 0x168   : > { %v382_v35 = vpop.permute.xlu0 %381  ;;  %v392_v37 = vpop.permute.xlu1 %391  ;;  %960 = vmatprep.subr.bf16.mxu1 %v1663_v15  ;;  %1218 = vmatprep.mubr.msk.bf16.mxu1 %vm904_vm11, %v1215_v23  ;;  %v734_v49 = vsel %vm373_vm0, %v2285_v59, %v2287_v60  ;;  %v999_v59 = vunpack.c.h.bf16 %v2024_v1  ;;  %v1001_v17 = vunpack.c.h.bf16 %v2022_v0 }
 0x169   : > { %v387_v12 = vsel %vm385_vm8, %v380_v56, %v382_v35 }
 0x16a   : > { %832 = vrot.lane.b32.xlu0 %v765_v61, %s1669_s30  ;;  %836 = vrot.lane.b32.xlu1 %v771_v62, %s1669_s30 }
 0x16c   : > { %v394_v36 = vpop.permute.xlu0 %393  ;;  %v378_v63 = vpop.permute.xlu1 %377 }
 0x16d   : > { %v399_v42 = vsel %vm397_vm9, %v392_v37, %v394_v36  ;;  %v386_v20 = vsel %vm385_vm8, %v378_v63, %v380_v56  ;;  %v735_v56 = vsel %vm373_vm0, %v2287_v60, %v2300_v9  ;;  %v892_v60 = vld [vmem:[%s2674_s12] sm:$0xff]  ;;  %vm457_vm0 = vcmask 736256   ;;  %s1671_s12 = smov [#allocation8]  }
 0x16e   : > { %838 = vrot.lane.b32.xlu0 %v774_v2, %s1669_s30  ;;  %834 = vrot.lane.b32.xlu1 %v768_v6, %s1669_s30  ;;  %v556_v38 = vsel %vm537_vm1, %v387_v12, %v399_v42  ;;  %s1500_s22 = sshll.u32 %s1671_s12, 4  ;;  %s1501_s22 = int_to_ptr.vmem [resolvable:$false] %s1500_s22 }
 0x16f   : > { %919 = vmatprep.subr.bf16.mxu0 %v556_v38  ;;  %s1502_s14 = scalar_lea.vmem %s1501_s22, 768 }
 0x170   : > { %v390_v18 = vpop.permute.xlu0 %389  ;;  %v384_v19 = vpop.permute.xlu1 %383 }
 0x171   : > { %v398_v43 = vsel %vm397_vm9, %v390_v18, %v392_v37  ;;  %v388_v26 = vsel %vm385_vm8, %v382_v35, %v384_v19  ;;  %v1379_v35 = vpack.i.bf16 %v999_v59, %v998_v34  ;;  %v1384_v37 = vpack.i.bf16 %v1001_v17, %v1000_v13 }
 0x172   : > { %840 = vrot.lane.b32.xlu0 %v777_v45, %s1669_s30  ;;  %844 = vrot.lane.b32.xlu1 %v783_v21, %s1669_s30  ;;  %v552_v40 = vsel %vm537_vm1, %v386_v20, %v398_v43 }
 0x173   : > { %920 = vmatpush1.bf16.msra.mxu0 %v552_v40 }
 0x174   : > { %v396_v48 = vpop.permute.xlu0 %395  ;;  %v404_v24 = vpop.permute.xlu1 %403 }
 0x175   : > { %v400_v27 = vsel %vm397_vm9, %v394_v36, %v396_v48 }
 0x176   : > { %846 = vrot.lane.b32.xlu0 %v786_v28, %s1669_s30  ;;  %842 = vrot.lane.b32.xlu1 %v780_v8, %s1669_s30  ;;  %v560_v7 = vsel %vm537_vm1, %v388_v26, %v400_v27 }
 0x177   : > { %961 = vmatpush1.bf16.msra.mxu1 %v560_v7 }
 0x178   : > { %v406_v46 = vpop.permute.xlu0 %405  ;;  %v416_v50 = vpop.permute.xlu1 %415  ;;  %962 = vmatprep.subr.bf16.mxu1 %v1663_v15 }
 0x179   : > { %v411_v54 = vsel %vm409_vm12, %v404_v24, %v406_v46 }
 0x17a   : > { %848 = vrot.lane.b32.xlu0 %v789_v25, %s1669_s30  ;;  %850 = vrot.lane.b32.xlu1 %v733_v10, %s1669_s30 }
 0x17c   : > { %v418_v53 = vpop.permute.xlu0 %417  ;;  %v402_v55 = vpop.permute.xlu1 %401 }
 0x17d   : > { %v423_v11 = vsel %vm421_vm13, %v416_v50, %v418_v53  ;;  %v410_v30 = vsel %vm409_vm12, %v402_v55, %v404_v24 }
 0x17e   : > { %852 = vrot.lane.b32.xlu0 %v734_v49, %s1669_s30  ;;  %854 = vrot.lane.b32.xlu1 %v735_v56, %s1669_s30  ;;  %v568_v57 = vsel %vm537_vm1, %v411_v54, %v423_v11 }
 0x17f   : > { %921 = vmatprep.subr.bf16.mxu0 %v568_v57 }
 0x180   : > { %v414_v31 = vpop.permute.xlu0 %413  ;;  %v408_v58 = vpop.permute.xlu1 %407 }
 0x181   : > { %v422_v33 = vsel %vm421_vm13, %v414_v31, %v416_v50  ;;  %v412_v62 = vsel %vm409_vm12, %v406_v46, %v408_v58 }
 0x182   : > { %856 = vrot.lane.b32.xlu0 %v2300_v9, %s1669_s30  ;;  %v564_v1 = vsel %vm537_vm1, %v410_v30, %v422_v33  ;;  %895 = vperm.xlu1 %1378, %v892_v60   ;;  %s1047_s30 = sshll.u32 %s345_s5, 4  ;;  %s2538_s30 = int_to_ptr.vmem [resolvable:$true] %s1047_s30 }
 0x183   : > { %922 = vmatpush1.bf16.msra.mxu0 %v564_v1  ;;  %s1496_s1 = scalar_lea.vmem %s2538_s30, 384  ;;  %p1503_p4 = scmp.lt.s32.totalorder %s2538_s30, %s1501_s22 }
 0x184   : > { %v420_v0 = vpop.permute.xlu0 %419  ;;  %v428_v61 = vpop.permute.xlu1 %427  ;;  %p1497_p9 = scmp.ne.s32.totalorder %s2538_s30, %s1496_s1  ;;  %p1504_p11 = scmp.lt.s32.totalorder %s1502_s14, %s1496_s1 }
 0x185   : > { %v424_v16 = vsel %vm421_vm13, %v418_v53, %v420_v0 }
 0x186   : > { %v572_v32 = vsel %vm537_vm1, %v412_v62, %v424_v16  ;;  %1380 = vrot.lane.b32.xlu0 %v1379_v35, %s1666_s18  ;;  %1385 = vrot.lane.b32.xlu1 %v1384_v37, %s1666_s18  ;;  %s1043_s18 = sadd.s32 %s1225_s4, %s1224_s3  ;;  %p1498_p1 = pnand %p1497_p9, %p2678_p12 }
 0x187   : > { %963 = vmatpush1.bf16.msra.mxu1 %v572_v32  ;;  %s1219_s17 = sshll.u32 %s1043_s18, 7  ;;  %p1505_p7 = por %p1504_p11, %p1503_p4 }
 0x188   : > { %v430_v9 = vpop.permute.xlu0 %429  ;;  %v440_v36 = vpop.permute.xlu1 %439  ;;  %964 = vmatprep.subr.bf16.mxu1 %v1663_v15  ;;  %s2536_s27 = scalar_lea.hbm %s2677_s7, %s1219_s17  ;;  %p1499_p2 = pneg %p1498_p1 }
 0x189   : > { %v435_v12 = vsel %vm433_vm14, %v428_v61, %v430_v9 }
 0x18a   : > { %p1506_p3 = pnand %p1505_p7, %p1499_p2 }
 0x18c   : > { %v442_v63 = vpop.permute.xlu0 %441  ;;  %v426_v6 = vpop.permute.xlu1 %425 }
 0x18d   : > { %v447_v42 = vsel %vm445_vm15, %v440_v36, %v442_v63  ;;  %v434_v38 = vsel %vm433_vm14, %v426_v6, %v428_v61 }
 0x18e   : > { %v580_v2 = vsel %vm537_vm1, %v435_v12, %v447_v42 }
 0x18f   : > { %923 = vmatprep.subr.bf16.mxu0 %v580_v2 }
 0x190   : > { %v438_v14 = vpop.permute.xlu0 %437  ;;  %v432_v39 = vpop.permute.xlu1 %431 }
 0x191   : > { %v446_v41 = vsel %vm445_vm15, %v438_v14, %v440_v36  ;;  %v436_v43 = vsel %vm433_vm14, %v430_v9, %v432_v39 }
 0x192   : > { %v576_v18 = vsel %vm537_vm1, %v434_v38, %v446_v41 }
 0x193   : > { %924 = vmatpush1.bf16.msra.mxu0 %v576_v18 }
 0x194   : > { %v444_v19 = vpop.permute.xlu0 %443  ;;  %v452_v20 = vpop.permute.xlu1 %451 }
 0x195   : > { %v448_v45 = vsel %vm445_vm15, %v442_v63, %v444_v19 }
 0x196   : > { %v584_v21 = vsel %vm537_vm1, %v436_v43, %v448_v45 }
 0x197   : > { %965 = vmatpush1.bf16.msra.mxu1 %v584_v21 }
 0x198   : > { %v454_v22 = vpop.permute.xlu0 %453  ;;  %v450_v40 = vpop.permute.xlu1 %449  ;;  %966 = vmatprep.subr.bf16.mxu1 %v1663_v15 }
 0x199   : > { %v459_v23 = vsel %vm457_vm0, %v452_v20, %v454_v22  ;;  %v458_v8 = vsel %vm457_vm0, %v450_v40, %v452_v20 }
 0x19a   : > { %v592_v48 = vsel %vm537_vm1, %v459_v23, %v2032_v3  ;;  %v588_v24 = vsel %vm537_vm1, %v458_v8, %v2044_v5 }
 0x19b   : > { %925 = vmatprep.subr.bf16.mxu0 %v592_v48 }
 0x19c   : > { %v456_v26 = vpop.permute.xlu0 %455  ;;  %926 = vmatpush1.bf16.msra.mxu0 %v588_v24  ;;  %v485_v27 = vpop.permute.xlu1 %484 }
 0x19d   : > { %v460_v28 = vsel %vm457_vm0, %v454_v22, %v456_v26 }
 0x19e   : > { %v596_v29 = vsel %vm537_vm1, %v460_v28, %v2040_v4 }
 0x19f   : > { %967 = vmatpush1.bf16.msra.mxu1 %v596_v29 }
 0x1a0   : > { %v487_v7 = vpop.permute.xlu0 %486  ;;  %v483_v46 = vpop.permute.xlu1 %482  ;;  %968 = vmatprep.subr.bf16.mxu1 %v1663_v15 }
 0x1a1   : > { %v491_v50 = vsel %vm385_vm8, %v485_v27, %v487_v7  ;;  %v490_v3 = vsel %vm385_vm8, %v483_v46, %v485_v27 }
 0x1a2   : > { %v604_v5 = vsel %vm537_vm1, %v2244_v47, %v491_v50  ;;  %v600_v10 = vsel %vm537_vm1, %v2263_v52, %v490_v3 }
 0x1a3   : > { %927 = vmatprep.subr.bf16.mxu0 %v604_v5 }
 0x1a4   : > { %v489_v25 = vpop.permute.xlu0 %488  ;;  %928 = vmatpush1.bf16.msra.mxu0 %v600_v10  ;;  %v496_v49 = vpop.permute.xlu1 %495 }
 0x1a5   : > { %v492_v4 = vsel %vm385_vm8, %v487_v7, %v489_v25 }
 0x1a6   : > { %v608_v53 = vsel %vm537_vm1, %v2259_v51, %v492_v4 }
 0x1a7   : > { %969 = vmatpush1.bf16.msra.mxu1 %v608_v53 }
 0x1a8   : > { %v498_v55 = vpop.permute.xlu0 %497  ;;  %v507_v56 = vpop.permute.xlu1 %506  ;;  %970 = vmatprep.subr.bf16.mxu1 %v1663_v15 }
 0x1a9   : > { %v502_v47 = vsel %vm397_vm9, %v496_v49, %v498_v55 }
 0x1ac   : > { %v509_v54 = vpop.permute.xlu0 %508  ;;  %v494_v11 = vpop.permute.xlu1 %493 }
 0x1ad   : > { %v513_v52 = vsel %vm409_vm12, %v507_v56, %v509_v54  ;;  %v501_v13 = vsel %vm397_vm9, %v494_v11, %v496_v49 }
 0x1ae   : > { %v616_v34 = vsel %vm537_vm1, %v502_v47, %v513_v52 }
 0x1af   : > { %929 = vmatprep.subr.bf16.mxu0 %v616_v34 }
 0x1b0   : > { %v505_v57 = vpop.permute.xlu0 %504  ;;  %v500_v59 = vpop.permute.xlu1 %499 }
 0x1b1   : > { %v512_v51 = vsel %vm409_vm12, %v505_v57, %v507_v56  ;;  %v503_v58 = vsel %vm397_vm9, %v498_v55, %v500_v59 }
 0x1b2   : > { %v612_v17 = vsel %vm537_vm1, %v501_v13, %v512_v51 }
 0x1b3   : > { %930 = vmatpush1.bf16.msra.mxu0 %v612_v17 }
 0x1b4   : > { %v511_v60 = vpop.permute.xlu0 %510  ;;  %v518_v31 = vpop.permute.xlu1 %517 }
 0x1b5   : > { %v514_v30 = vsel %vm409_vm12, %v509_v54, %v511_v60  ;;  %v1214_v60 = vcombine.low %v2398_v44, %v2398_v44 }
 0x1b6   : > { %v620_v33 = vsel %vm537_vm1, %v503_v58, %v514_v30 }
 0x1b7   : > { %971 = vmatpush1.bf16.msra.mxu1 %v620_v33 }
 0x1b8   : > { %v520_v1 = vpop.permute.xlu0 %519  ;;  %v529_v35 = vpop.permute.xlu1 %528  ;;  %972 = vmatprep.subr.bf16.mxu1 %v1663_v15 }
 0x1b9   : > { %v524_v61 = vsel %vm421_vm13, %v518_v31, %v520_v1 }
 0x1bc   : > { %v531_v37 = vpop.permute.xlu0 %530  ;;  %v516_v0 = vpop.permute.xlu1 %515 }
 0x1bd   : > { %v535_v62 = vsel %vm433_vm14, %v529_v35, %v531_v37  ;;  %v523_v36 = vsel %vm421_vm13, %v516_v0, %v518_v31 }
 0x1be   : > { %v628_v16 = vsel %vm537_vm1, %v524_v61, %v535_v62 }
 0x1bf   : > { %931 = vmatprep.subr.bf16.mxu0 %v628_v16 }
 0x1c0   : > { %v527_v32 = vpop.permute.xlu0 %526  ;;  %v522_v9 = vpop.permute.xlu1 %521 }
 0x1c1   : > { %v534_v63 = vsel %vm433_vm14, %v527_v32, %v529_v35  ;;  %v525_v2 = vsel %vm421_vm13, %v520_v1, %v522_v9 }
 0x1c2   : > { %v624_v6 = vsel %vm537_vm1, %v523_v36, %v534_v63 }
 0x1c3   : > { %932 = vmatpush1.bf16.msra.mxu0 %v624_v6 }
 0x1c4   : > { %v533_v12 = vpop.permute.xlu0 %532  ;;  %v813_v42 = vpop.permute.xlu1 %812 }
 0x1c5   : > { %v536_v14 = vsel %vm433_vm14, %v531_v37, %v533_v12 }
 0x1c6   : > { %v632_v39 = vsel %vm537_vm1, %v525_v2, %v536_v14 }
 0x1c7   : > { %973 = vmatpush1.bf16.msra.mxu1 %v632_v39 }
 0x1c8   : > { %v815_v38 = vpop.permute.xlu0 %814  ;;  %v811_v41 = vpop.permute.xlu1 %810  ;;  %974 = vmatprep.subr.bf16.mxu1 %v1663_v15 }
 0x1c9   : > { %v859_v18 = vsel %vm445_vm15, %v813_v42, %v815_v38  ;;  %v858_v19 = vsel %vm445_vm15, %v811_v41, %v813_v42 }
 0x1ca   : > { %933 = vmatprep.subr.bf16.mxu0 %v859_v18 }
 0x1cb   : > { %934 = vmatpush1.bf16.msra.mxu0 %v858_v19 }
 0x1cc   : > { %v817_v20 = vpop.permute.xlu0 %816  ;;  %v821_v43 = vpop.permute.xlu1 %820 }
 0x1cd   : > { %v860_v45 = vsel %vm445_vm15, %v815_v38, %v817_v20 }
 0x1ce   : > { %975 = vmatpush1.bf16.msra.mxu1 %v860_v45 }
 0x1cf   : > { %976 = vmatprep.subr.bf16.mxu1 %v1663_v15 }
 0x1d0   : > { %v823_v21 = vpop.permute.xlu0 %822  ;;  %v819_v22 = vpop.permute.xlu1 %818 }
 0x1d1   : > { %v862_v40 = vsel %vm445_vm15, %v821_v43, %v823_v21  ;;  %v861_v23 = vsel %vm445_vm15, %v819_v22, %v821_v43 }
 0x1d2   : > { %935 = vmatprep.subr.bf16.mxu0 %v862_v40 }
 0x1d3   : > { %936 = vmatpush1.bf16.msra.mxu0 %v861_v23 }
 0x1d4   : > { %v825_v8 = vpop.permute.xlu0 %824  ;;  %v829_v48 = vpop.permute.xlu1 %828 }
 0x1d5   : > { %v863_v24 = vsel %vm445_vm15, %v823_v21, %v825_v8 }
 0x1d6   : > { %977 = vmatpush1.bf16.msra.mxu1 %v863_v24 }
 0x1d7   : > { %978 = vmatprep.subr.bf16.mxu1 %v1663_v15 }
 0x1d8   : > { %v831_v26 = vpop.permute.xlu0 %830  ;;  %v827_v27 = vpop.permute.xlu1 %826 }
 0x1d9   : > { %v865_v28 = vsel %vm445_vm15, %v829_v48, %v831_v26  ;;  %v864_v29 = vsel %vm445_vm15, %v827_v27, %v829_v48 }
 0x1da   : > { %937 = vmatprep.subr.bf16.mxu0 %v865_v28 }
 0x1db   : > { %938 = vmatpush1.bf16.msra.mxu0 %v864_v29 }
 0x1dc   : > { %v833_v7 = vpop.permute.xlu0 %832  ;;  %v837_v46 = vpop.permute.xlu1 %836 }
 0x1dd   : > { %v866_v50 = vsel %vm445_vm15, %v831_v26, %v833_v7 }
 0x1de   : > { %979 = vmatpush1.bf16.msra.mxu1 %v866_v50 }
 0x1df   : > { %980 = vmatprep.subr.bf16.mxu1 %v1663_v15 }
 0x1e0   : > { %v839_v3 = vpop.permute.xlu0 %838  ;;  %v835_v5 = vpop.permute.xlu1 %834 }
 0x1e1   : > { %v868_v10 = vsel %vm445_vm15, %v837_v46, %v839_v3  ;;  %v867_v25 = vsel %vm445_vm15, %v835_v5, %v837_v46 }
 0x1e2   : > { %939 = vmatprep.subr.bf16.mxu0 %v868_v10 }
 0x1e3   : > { %940 = vmatpush1.bf16.msra.mxu0 %v867_v25 }
 0x1e4   : > { %v841_v49 = vpop.permute.xlu0 %840  ;;  %v845_v4 = vpop.permute.xlu1 %844 }
 0x1e5   : > { %v869_v53 = vsel %vm445_vm15, %v839_v3, %v841_v49 }
 0x1e6   : > { %981 = vmatpush1.bf16.msra.mxu1 %v869_v53 }
 0x1e7   : > { %982 = vmatprep.subr.bf16.mxu1 %v1663_v15 }
 0x1e8   : > { %v847_v55 = vpop.permute.xlu0 %846  ;;  %v843_v56 = vpop.permute.xlu1 %842 }
 0x1e9   : > { %v871_v54 = vsel %vm445_vm15, %v845_v4, %v847_v55  ;;  %v870_v11 = vsel %vm445_vm15, %v843_v56, %v845_v4 }
 0x1ea   : > { %941 = vmatprep.subr.bf16.mxu0 %v871_v54 }
 0x1eb   : > { %942 = vmatpush1.bf16.msra.mxu0 %v870_v11 }
 0x1ec   : > { %v849_v47 = vpop.permute.xlu0 %848  ;;  %v851_v52 = vpop.permute.xlu1 %850 }
 0x1ed   : > { %v872_v34 = vsel %vm445_vm15, %v847_v55, %v849_v47 }
 0x1ee   : > { %983 = vmatpush1.bf16.msra.mxu1 %v872_v34 }
 0x1ef   : > { %984 = vmatprep.subr.bf16.mxu1 %v1663_v15 }
 0x1f0   : > { %v853_v57 = vpop.permute.xlu0 %852  ;;  %v855_v59 = vpop.permute.xlu1 %854 }
 0x1f1   : > { %v873_v13 = vsel %vm445_vm15, %v851_v52, %v853_v57  ;;  %v874_v51 = vsel %vm445_vm15, %v853_v57, %v855_v59 }
 0x1f2   : > { %1216 = vmatprep.subr.msk.bf16.mxu0 %vm537_vm1, %v874_v51  ;;  %v909_v17 = vsel %vm537_vm1, %v873_v13, 0 }
 0x1f3   : > { %944 = vmatpush1.bf16.msra.mxu0 %v909_v17 }
 0x1f4   : > { %v857_v31 = vpop.permute.xlu0 %856 }
 0x1f5   : > { %v875_v15 = vsel %vm445_vm15, %v855_v59, %v857_v31 }
 0x1f6   : > { %950 = vmatmul.mubr.bf16.vlgmr.msra.gmra.mrb[0].mxu0 %v1214_v60  ;;  %v915_v58 = vsel %vm537_vm1, %v875_v15, 0 }
 0x1f7   : > { %985 = vmatpush1.bf16.msra.mxu1 %v915_v58 }
 0x1f8   : > { %v1381_v33 = vpop.permute.xlu0 %1380 }
 0x1f9   : > { %v1383_v35 = vunpack.i.h.bf16 %v1381_v33  ;;  %v1382_v37 = vunpack.i.l.bf16 %v1381_v33 }
 0x1fa   : > { %991 = vmatmul.mubr.bf16.vlgmr.msra.gmra.mrb[0].mxu1 %v1214_v60 }
 0x1fb   : > { %v1015_v61 = vsel %vm409_vm12, %v1382_v37, %v1383_v35 }
 0x201   : > { %v896_v30 = vpop.permute.xlu1 %895 }
 0x205   : > { %v1386_v1 = vpop.permute.xlu1 %1385 }
 0x206   : > { %v1387_v0 = vunpack.i.l.bf16 %v1386_v1  ;;  %v1388_v62 = vunpack.i.h.bf16 %v1386_v1 }
 0x208   : > { %v1016_v9 = vsel %vm409_vm12, %v1383_v35, %v1387_v0  ;;  %v1017_v14 = vsel %vm409_vm12, %v1387_v0, %v1388_v62 }
 0x2c9   : > { %v951_v44 = vpop.f32.mrb[0].mxu0 }
 0x2ca   : > { %v952_v16 = vadd.f32 %v951_v44, %v896_v30  ;;  %v953_v32 = vpop.f32.mrb[1].mxu0 }
 0x2cb   : > { %v954_v36 = vadd.f32 %v953_v32, %v896_v30  ;;  %v955_v63 = vpop.f32.mrb[2].mxu0 }
 0x2cc   : > { %v1021_v6 = vadd.f32 %v1015_v61, %v952_v16  ;;  %v956_v12 = vpop.f32.mrb[3].mxu0 }
 0x2cd   : > { %v1022_v42 = vadd.f32 %v1016_v9, %v954_v36  ;;  %v992_v2 = vpop.f32.mrb[0].mxu1 }
 0x2ce   : > { %v1024_v39 = vmax.f32 %v1021_v6, 0.0  ;;  %v993_v38 = vadd.f32 %v992_v2, %v896_v30  ;;  %v994_v41 = vpop.f32.mrb[1].mxu1 }
 0x2cf   : > { %v1025_v18 = vmax.f32 %v1022_v42, 0.0  ;;  %v995_v19 = vpop.f32.mrb[2].mxu1 }
 0x2d0   : > { %1027 = vst [vmem:[%s345_s5] sm:$0xff] %v1024_v39  ;;  %v1023_v20 = vadd.f32 %v1017_v14, %v993_v38  ;;  %v996_v43 = vpop.f32.mrb[3].mxu1 }
 0x2d1   : > { %1028 = vst [vmem:[%s345_s5 + $0x8] sm:$0xff] %v1025_v18 }
 0x2d2   : > { %v1026_v45 = vmax.f32 %v1023_v20, 0.0 }
 0x2d4   : > { %1029 = vst [vmem:[%s345_s5 + $0x10] sm:$0xff] %v1026_v45 }
 0x2d5   : > { %1509 = shalt.err (!%p1506_p3)
}
 0x2d6   : > { %s1510_s10 = scalar_lea.hbm %s2536_s27, 384  ;;  %s1514_s16 = scalar_lea.hbm %s2677_s7, 3072 }
 0x2d7   : > { %p1511_p5 = scmp.ne.s32.totalorder %s2536_s27, %s1510_s10  ;;  %p1515_p6 = scmp.lt.u32.totalorder %s2536_s27, %s2677_s7 }
 0x2d8   : > { %p1516_p13 = scmp.lt.u32.totalorder %s1514_s16, %s1510_s10  ;;  %p1518_p9 = scmp.lt.u32.totalorder %s1510_s10, %s2536_s27 }
 0x2d9   : > { %p1512_p10 = pnand %p1511_p5, %p2678_p12 }
 0x2da   : > { %p1517_p0 = por %p1516_p13, %p1515_p6 }
 0x2db   : > { %p1513_p8 = pneg %p1512_p10 }
 0x2dc   : > { %p1519_p1 = por %p1518_p9, %p1517_p0 }
 0x2de   : > { %p1520_p2 = pnand %p1519_p1, %p1513_p8 }
 0x2e0   : > { %1523 = shalt.err (!%p1520_p2)
}
 0x2e1   : > { %1232 = dma.vmem_to_hbm [thread:$0]  (%p2678_p12), %s2538_s30, 384, %s2536_s27, %s1031_s28  }
 0x2e2 PF: > { %p1249_p4 = scmp.ge.s32.totalorder %s1650_s6, 2  ;;  %s1059_s5 = sand.u32 1, %s1622_s24  }
 0x2e3   : > { %p2679_p11 = scmp.ne.s32.totalorder %s2659_s8, 0  ;;  %s1060_s11 = scalar_lea.sflag [#allocation4], %s1059_s5 }
 0x2e5   : > { %p1245_p7 = pnand %p1249_p4, %p2679_p11 }
 0x2e7   : > { %1593 = dma.done.wait (!%p1245_p7), %s1060_s11, 384  }
 0x2e8   : > { %1595 = vsyncadd (!%p1245_p7), %s1060_s11, 4294966912  ;;  %s24_s6 = sadd.s32 1, %s1650_s6   ;;  %s2681_s13 = sld [smem:[#allocation13_spill]] }
 0x2e9   : > { %p2567_p3 = scmp.ge.s32.totalorder %s24_s6, 10   ;;  %s2682_s30 = sld [smem:[#allocation20_spill]] }
 0x2ea   : > { %s2683_s27 = smov %s1885_s21  ;;  %s2684_s28 = sld [smem:[#allocation16_spill]] }
 0x2eb   : > { %s2685_s8 = sld [smem:[#allocation17_spill]]  ;;  %s2686_s1 = sld [smem:[#allocation18_spill]] }
 0x2ec   : > { %s2687_s18 = smov %s1602_s19  ;;  %s2688_s19 = smov %s1606_s20 }
 0x2ed   : > { %s2689_s20 = smov %s1952_s9  ;;  %s2691_s22 = smov %s1618_s23 }
 0x2ee   : > { %s2690_s21 = smov %s2681_s13  ;;  %s2693_s24 = smov %s1626_s25 }
 0x2ef   : > { %s2692_s23 = smov %s2682_s30  ;;  %s2694_s25 = smov %s1630_s26 }
 0x2f0   : > { %s2695_s26 = smov %s2683_s27  ;;  %s2696_s27 = smov %s1642_s29 }
 0x2f1   : > { %s2697_s29 = smov %s2685_s8  ;;  %s2698_s30 = smov %s2686_s1 }
 0x2f2   :  { %23 = sbr.rel (!%p2567_p3) target bundleno = 17 (0x11), region = 109 }
 0x2f9   :  { %1065 = vsyncpa [#allocation3], 1 }
 0x2fa   :  { %1067 = vsyncpa [#allocation3 + $0x1], 1 }
 0x2fb   :  { %1068 = vsyncpa [#allocation6], 1 }
 0x2fc   :  { %1070 = vsyncpa [#allocation6 + $0x1], 1 }
 0x2fd   :  { %1071 = vsyncpa [#allocation4], 1 }
 0x2fe   :  { %1073 = vsyncpa [#allocation4 + $0x1], 1 }

</bundles_post_ra>
